<compile_context>
chip_gen: v6e
topology: v6e:2x2x1
jax: 0.10.0
libtpu: 0.0.40
codegen_flags: <defaults>
</compile_context>

<pallas_src>
import jax
import jax.numpy as jnp
from jax.experimental import pallas as pl
from jax.experimental.pallas import tpu as pltpu

EPS = 1e-5              # PyTorch InstanceNorm1d default eps
ROWS_PER_STEP = 8192    # target original batch rows per grid step


def _round_up(a, m):
    return ((a + m - 1) // m) * m


def _cdiv(a, b):
    return -(-a // b)


def _pick_fold_factor():
    """Lane-fold factor G: match the MXU width (128-wide on <=v5, 256 on v6e/v7x)."""
    try:
        kind = jax.devices()[0].device_kind.lower()
    except Exception:
        kind = ""
    if any(tag in kind for tag in ("v2", "v3", "v4", "v5")):
        return 4
    return 8


def suppress_kernel(x_ref, cmat_ref, mavg_ref, w1_ref, b1_ref, w2_ref, b2_ref, o_ref):
    # x_ref:    [TB, G*S*C]    rows = G-folded batch, lane index = g*(S*C) + s*C + c
    # cmat_ref: [G*S*C, G*S*C] centering operator kron(eye(G), I - mean_op)   (f32)
    # mavg_ref: [G*S*C, G*S*C] class-preserving mean operator                 (f32)
    # w1_ref:   [G*S*C, G*E*C] mlp1, class-block-diagonal, G-folded    (f32 or bf16)
    # b1_ref:   [1, G*E*C]                                                    (f32)
    # w2_ref:   [G*E*C, G*C]   mlp2, class-block-diagonal, G-folded    (f32 or bf16)
    # b2_ref:   [1, 1]
    # o_ref:    [TB, G*C]
    x = x_ref[...]

    # InstanceNorm1d: centering folded into a single contraction (cen = x - mean),
    # biased two-pass variance; norm path kept in f32 for accuracy.
    cen = jnp.dot(x, cmat_ref[...], preferred_element_type=jnp.float32)
    var = jnp.dot(cen * cen, mavg_ref[...], preferred_element_type=jnp.float32)
    xn = cen * jax.lax.rsqrt(var + EPS)

    # mlp1 + ReLU  (MXU operands may be bf16; accumulation stays f32).
    h = jnp.dot(xn.astype(w1_ref.dtype), w1_ref[...],
                preferred_element_type=jnp.float32) + b1_ref[...]
    h = jnp.maximum(h, 0.0)

    # mlp2 + sigmoid.
    y = jnp.dot(h.astype(w2_ref.dtype), w2_ref[...],
                preferred_element_type=jnp.float32) + b2_ref[...]
    o_ref[...] = jax.nn.sigmoid(y)


def suppress_net_forward(inputs, w1, b1, w2, b2, *, mlp_dtype=jnp.bfloat16):
    """inputs: [B, S, C]; w1: [E, S]; b1: [E]; w2: [1, E] or [E]; b2: [1] or scalar.
    Returns [B, C], matching the PyTorch module.  `mlp_dtype` controls the MXU
    operand precision of the mlp1/mlp2 contractions only (norm path stays f32)."""
    B, S, C = inputs.shape
    E = w1.shape[0]
    SC, EC = S * C, E * C

    G = _pick_fold_factor()
    LX, LH, LY = G * SC, G * EC, G * C

    # Free reshape of the contiguous input: rows = batch, lane index = s*C + c.
    x2 = inputs.reshape(B, SC).astype(jnp.float32)

    # Fold G batch rows onto the lane axis ("super-rows") and pick the batch tile.
    # Padded rows are zeros: they stay finite through rsqrt(0 + eps) and are
    # trimmed before returning.
    R = _cdiv(B, G)                       # super-rows needed
    if R <= 8:
        TB, Rp = R, R                     # single whole-array block
    else:
        # >= 2 (targets 4) grid steps so "parallel" can use both v7x TensorCores;
        # row tiles are multiples of 8 (sublane granularity).
        TB = min(ROWS_PER_STEP // G, _round_up(_cdiv(R, 4), 8))
        Rp = _round_up(R, TB)
    Bp = Rp * G
    if Bp != B:
        x2 = jnp.pad(x2, ((0, Bp - B), (0, 0)))
    xg = x2.reshape(Rp, LX)               # free reshape: G rows folded onto lanes

    # Build the small class-block-diagonal operators, then G-fold with kron(eye(G), .).
    f32 = jnp.float32
    eye_c = jnp.eye(C, dtype=f32)
    eye_g = jnp.eye(G, dtype=f32)
    mavg = jnp.tile(eye_c, (S, S)) / f32(S)                                      # [SC, SC]
    cmat = jnp.eye(SC, dtype=f32) - mavg                                         # [SC, SC]
    w1f = w1.astype(f32)
    w1big = (w1f.T[:, None, :, None] * eye_c[None, :, None, :]).reshape(SC, EC)  # [SC, EC]
    b1big = jnp.repeat(b1.astype(f32), C).reshape(1, EC)                         # [1, EC]
    w2v = jnp.asarray(w2, f32).reshape(-1)                                       # [E]
    w2big = (w2v[:, None, None] * eye_c[None, :, :]).reshape(EC, C)              # [EC, C]
    b2r = jnp.asarray(b2, dtype=f32).reshape(1, 1)                               # [1, 1]

    mavg_g = jnp.kron(eye_g, mavg)                     # [LX, LX] f32
    cmat_g = jnp.kron(eye_g, cmat)                     # [LX, LX] f32
    w1_g = jnp.kron(eye_g, w1big).astype(mlp_dtype)    # [LX, LH]
    b1_g = jnp.tile(b1big, (1, G))                     # [1, LH]  f32
    w2_g = jnp.kron(eye_g, w2big).astype(mlp_dtype)    # [LH, LY]

    out = pl.pallas_call(
        suppress_kernel,
        out_shape=jax.ShapeDtypeStruct((Rp, LY), jnp.float32),
        grid=(Rp // TB,),
        in_specs=[
            pl.BlockSpec((TB, LX), lambda i: (i, 0)),   # activations: tiled over rows
            pl.BlockSpec((LX, LX), lambda i: (0, 0)),   # operators stay resident
            pl.BlockSpec((LX, LX), lambda i: (0, 0)),
            pl.BlockSpec((LX, LH), lambda i: (0, 0)),
            pl.BlockSpec((1, LH), lambda i: (0, 0)),
            pl.BlockSpec((LH, LY), lambda i: (0, 0)),
            pl.BlockSpec((1, 1), lambda i: (0, 0)),
        ],
        out_specs=pl.BlockSpec((TB, LY), lambda i: (i, 0)),
        compiler_params=pltpu.CompilerParams(
            dimension_semantics=("parallel",),          # row tiles are independent
            vmem_limit_bytes=32 * 1024 * 1024,          # safe ceiling on v5e/v6e/v7x
        ),
    )(xg, cmat_g, mavg_g, w1_g, b1_g, w2_g, b2r)

    # Free un-fold back to [B, C] and trim padded rows.
    return out.reshape(Bp, C)[:B]


def reference_forward(inputs, w1, b1, w2, b2):
    """Pure-JAX reference mirroring the PyTorch module (PyTorch weight layouts)."""
    x = jnp.transpose(inputs, (0, 2, 1)).astype(jnp.float32)      # [B, C, S]
    mean = jnp.mean(x, axis=-1, keepdims=True)
    var = jnp.mean((x - mean) ** 2, axis=-1, keepdims=True)
    xn = (x - mean) / jnp.sqrt(var + EPS)
    h = jnp.maximum(xn @ w1.T + b1, 0.0)                          # [B, C, E]
    y = jax.nn.sigmoid(h @ w2.reshape(-1, 1) + b2.reshape(1,))    # [B, C, 1]
    return y[..., 0]


if __name__ == "__main__":
    # opt = {'num_of_class': 5, 'segment_size': 8}
    n_class = 5 - 1            # num_of_class - 1
    seglen = 8                 # segment_size
    emb = 2 * seglen           # n_embedding_dim

    key = jax.random.PRNGKey(0)
    k_w1, k_b1, k_w2, k_b2, k_x = jax.random.split(key, 5)

    # PyTorch-layout parameters (Linear: [out_features, in_features]).
    bound1 = 1.0 / (seglen ** 0.5)
    w1 = jax.random.uniform(k_w1, (emb, seglen), jnp.float32, -bound1, bound1)
    b1 = jax.random.uniform(k_b1, (emb,), jnp.float32, -bound1, bound1)
    bound2 = 1.0 / (emb ** 0.5)
    w2 = jax.random.uniform(k_w2, (1, emb), jnp.float32, -bound2, bound2)
    b2 = jax.random.uniform(k_b2, (1,), jnp.float32, -bound2, bound2)

    fwd = jax.jit(suppress_net_forward, static_argnames=("mlp_dtype",))

    # batch=2: spec-sized smoke test (single block);
    # batch=8192: multi-step pipelined / megacore-parallel grid;
    # batch=5000: ragged batch exercising the pad-and-trim path.
    for batch in (2, 8192, 5000):
        kx = jax.random.fold_in(k_x, batch)
        x = jax.random.normal(kx, (batch, seglen, n_class), jnp.float32)
        ref = reference_forward(x, w1, b1, w2, b2)

        # Default path: bf16 MXU operands on mlp1/mlp2 (f32 accumulation).
        out = jax.block_until_ready(fwd(x, w1, b1, w2, b2))
        assert out.shape == (batch, n_class), out.shape
        err_bf16 = jnp.max(jnp.abs(out - ref))
        assert jnp.allclose(out, ref, atol=2e-2), (batch, "bf16", err_bf16)

        # Full-f32 path: matches the PyTorch module to tight tolerance.
        out32 = jax.block_until_ready(fwd(x, w1, b1, w2, b2, mlp_dtype=jnp.float32))
        err_f32 = jnp.max(jnp.abs(out32 - ref))
        assert jnp.allclose(out32, ref, atol=5e-5, rtol=5e-5), (batch, "f32", err_f32)

    print("KERNEL_OK")
</pallas_src>

<mosaic_0001>
module attributes {stable_mosaic.version = 11 : i64} {
  func.func @suppress_kernel(%arg0: i32, %arg1: memref<1x256xf32, #tpu.memory_space<vmem>>, %arg2: memref<256x256xf32, #tpu.memory_space<vmem>>, %arg3: memref<256x256xf32, #tpu.memory_space<vmem>>, %arg4: memref<256x512xbf16, #tpu.memory_space<vmem>>, %arg5: memref<1x512xf32, #tpu.memory_space<vmem>>, %arg6: memref<512x32xbf16, #tpu.memory_space<vmem>>, %arg7: memref<1x1xf32, #tpu.memory_space<vmem>>, %arg8: memref<1x32xf32, #tpu.memory_space<vmem>>) attributes {dimension_semantics = [#tpu.dimension_semantics<parallel>], iteration_bounds = array<i64: 1>, scalar_prefetch = 0 : i64, scratch_operands = 0 : i64, tpu.core_type = #tpu.core_type<tc>, window_params = [{transform_indices = @transform_0, window_bounds = array<i64: 1, 256>}, {pipeline_mode = #tpu.pipeline_mode<synchronous>, transform_indices = @transform_1, window_bounds = array<i64: 256, 256>}, {pipeline_mode = #tpu.pipeline_mode<synchronous>, transform_indices = @transform_2, window_bounds = array<i64: 256, 256>}, {pipeline_mode = #tpu.pipeline_mode<synchronous>, transform_indices = @transform_3, window_bounds = array<i64: 256, 512>}, {pipeline_mode = #tpu.pipeline_mode<synchronous>, transform_indices = @transform_4, window_bounds = array<i64: 1, 512>}, {pipeline_mode = #tpu.pipeline_mode<synchronous>, transform_indices = @transform_5, window_bounds = array<i64: 512, 32>}, {pipeline_mode = #tpu.pipeline_mode<synchronous>, transform_indices = @transform_6, window_bounds = array<i64: 1, 1>}, {transform_indices = @transform_7, window_bounds = array<i64: 1, 32>}]} {
    %c0 = arith.constant 0 : index
    %c0_0 = arith.constant 0 : index
    %0 = vector.load %arg1[%c0, %c0_0] : memref<1x256xf32, #tpu.memory_space<vmem>>, vector<1x256xf32>
    %c0_1 = arith.constant 0 : index
    %c0_2 = arith.constant 0 : index
    %1 = vector.load %arg2[%c0_1, %c0_2] : memref<256x256xf32, #tpu.memory_space<vmem>>, vector<256x256xf32>
    %cst = arith.constant dense<0.000000e+00> : vector<1x256xf32>
    %2 = tpu.matmul %0, %1, %cst {dimension_numbers = #tpu.dot_dimension_numbers<[1], [0], [0], [1], [0, 0, 1, 1], [], []>} : vector<1x256xf32>, vector<256x256xf32>, vector<1x256xf32> -> vector<1x256xf32>
    %3 = arith.mulf %2, %2 : vector<1x256xf32>
    %c0_3 = arith.constant 0 : index
    %c0_4 = arith.constant 0 : index
    %4 = vector.load %arg3[%c0_3, %c0_4] : memref<256x256xf32, #tpu.memory_space<vmem>>, vector<256x256xf32>
    %cst_5 = arith.constant dense<0.000000e+00> : vector<1x256xf32>
    %5 = tpu.matmul %3, %4, %cst_5 {dimension_numbers = #tpu.dot_dimension_numbers<[1], [0], [0], [1], [0, 0, 1, 1], [], []>} : vector<1x256xf32>, vector<256x256xf32>, vector<1x256xf32> -> vector<1x256xf32>
    %cst_6 = arith.constant 9.99999974E-6 : f32
    %6 = vector.broadcast %cst_6 : f32 to vector<1x256xf32>
    %7 = arith.addf %5, %6 : vector<1x256xf32>
    %8 = math.rsqrt %7 : vector<1x256xf32>
    %9 = arith.mulf %2, %8 : vector<1x256xf32>
    %10 = arith.truncf %9 : vector<1x256xf32> to vector<1x256xbf16>
    %c0_7 = arith.constant 0 : index
    %c0_8 = arith.constant 0 : index
    %11 = vector.load %arg4[%c0_7, %c0_8] : memref<256x512xbf16, #tpu.memory_space<vmem>>, vector<256x512xbf16>
    %cst_9 = arith.constant dense<0.000000e+00> : vector<1x512xf32>
    %12 = tpu.matmul %10, %11, %cst_9 {dimension_numbers = #tpu.dot_dimension_numbers<[1], [0], [0], [1], [0, 0, 1, 1], [], []>} : vector<1x256xbf16>, vector<256x512xbf16>, vector<1x512xf32> -> vector<1x512xf32>
    %c0_10 = arith.constant 0 : index
    %c0_11 = arith.constant 0 : index
    %13 = vector.load %arg5[%c0_10, %c0_11] : memref<1x512xf32, #tpu.memory_space<vmem>>, vector<1x512xf32>
    %14 = arith.addf %12, %13 : vector<1x512xf32>
    %cst_12 = arith.constant 0.000000e+00 : f32
    %15 = vector.broadcast %cst_12 : f32 to vector<1x512xf32>
    %16 = arith.maximumf %14, %15 : vector<1x512xf32>
    %17 = arith.truncf %16 : vector<1x512xf32> to vector<1x512xbf16>
    %c0_13 = arith.constant 0 : index
    %c0_14 = arith.constant 0 : index
    %18 = vector.load %arg6[%c0_13, %c0_14] : memref<512x32xbf16, #tpu.memory_space<vmem>>, vector<512x32xbf16>
    %cst_15 = arith.constant dense<0.000000e+00> : vector<1x32xf32>
    %19 = tpu.matmul %17, %18, %cst_15 {dimension_numbers = #tpu.dot_dimension_numbers<[1], [0], [0], [1], [0, 0, 1, 1], [], []>} : vector<1x512xbf16>, vector<512x32xbf16>, vector<1x32xf32> -> vector<1x32xf32>
    %c0_16 = arith.constant 0 : index
    %c0_17 = arith.constant 0 : index
    %20 = vector.load %arg7[%c0_16, %c0_17] : memref<1x1xf32, #tpu.memory_space<vmem>>, vector<1x1xf32>
    %21 = vector.broadcast %20 : vector<1x1xf32> to vector<1x32xf32>
    %22 = arith.addf %19, %21 : vector<1x32xf32>
    %23 = arith.negf %22 : vector<1x32xf32>
    %24 = math.exp %23 : vector<1x32xf32>
    %cst_18 = arith.constant 1.000000e+00 : f32
    %25 = vector.broadcast %cst_18 : f32 to vector<1x32xf32>
    %26 = arith.addf %25, %24 : vector<1x32xf32>
    %27 = arith.divf %25, %26 : vector<1x32xf32>
    %c0_19 = arith.constant 0 : index
    %c0_20 = arith.constant 0 : index
    %28 = vector.load %arg8[%c0_19, %c0_20] : memref<1x32xf32, #tpu.memory_space<vmem>>, vector<1x32xf32>
    tpu.vector_store %arg8[%c0_19, %c0_20], %27 {strides = array<i32>} : memref<1x32xf32, #tpu.memory_space<vmem>>, vector<1x32xf32>,
    return
  }
  func.func @transform_0(%arg0: i32) -> (i32, i32) {
    %c0_i32 = arith.constant 0 : i32
    %c0_i32_0 = arith.constant 0 : i32
    return %arg0, %c0_i32 : i32, i32
  }
  func.func @transform_1(%arg0: i32) -> (i32, i32) {
    %c0_i32 = arith.constant 0 : i32
    %c0_i32_0 = arith.constant 0 : i32
    %c0_i32_1 = arith.constant 0 : i32
    return %c0_i32, %c0_i32_0 : i32, i32
  }
  func.func @transform_2(%arg0: i32) -> (i32, i32) {
    %c0_i32 = arith.constant 0 : i32
    %c0_i32_0 = arith.constant 0 : i32
    %c0_i32_1 = arith.constant 0 : i32
    return %c0_i32, %c0_i32_0 : i32, i32
  }
  func.func @transform_3(%arg0: i32) -> (i32, i32) {
    %c0_i32 = arith.constant 0 : i32
    %c0_i32_0 = arith.constant 0 : i32
    %c0_i32_1 = arith.constant 0 : i32
    return %c0_i32, %c0_i32_0 : i32, i32
  }
  func.func @transform_4(%arg0: i32) -> (i32, i32) {
    %c0_i32 = arith.constant 0 : i32
    %c0_i32_0 = arith.constant 0 : i32
    %c0_i32_1 = arith.constant 0 : i32
    return %c0_i32, %c0_i32_0 : i32, i32
  }
  func.func @transform_5(%arg0: i32) -> (i32, i32) {
    %c0_i32 = arith.constant 0 : i32
    %c0_i32_0 = arith.constant 0 : i32
    %c0_i32_1 = arith.constant 0 : i32
    return %c0_i32, %c0_i32_0 : i32, i32
  }
  func.func @transform_6(%arg0: i32) -> (i32, i32) {
    %c0_i32 = arith.constant 0 : i32
    %c0_i32_0 = arith.constant 0 : i32
    %c0_i32_1 = arith.constant 0 : i32
    return %c0_i32, %c0_i32_0 : i32, i32
  }
  func.func @transform_7(%arg0: i32) -> (i32, i32) {
    %c0_i32 = arith.constant 0 : i32
    %c0_i32_0 = arith.constant 0 : i32
    return %arg0, %c0_i32 : i32, i32
  }
}

</mosaic_0001>

<bundles_post_ra>
// kernel: suppress_net_forward.1
= control target key start
LH: loop header
LB: loop body
LE: loop exit
PB: predicated region body
PF: predicated region fallthrough
CT: control target
= control target key end

     0   :  { %v95_v13 = vlaneseq  ;;  %vm1167_vm0 = vcmask 253952   ;;  %s2206_s1 = inlined_call_operand.vmem [shape: f32[256,256], index: 1, kind: input, shape index: {}]   ;;  %s2207_s0 = inlined_call_operand.vmem [shape: f32[1,256], index: 0, kind: input, shape index: {}]   ;;  %s2208_s2 = inlined_call_operand.vmem [shape: f32[256,256], index: 2, kind: input, shape index: {}]   ;;  %s2209_s3 = inlined_call_operand.vmem [shape: bf16[256,512], index: 3, kind: input, shape index: {}]   ;;  %s2210_s5 = inlined_call_operand.vmem [shape: bf16[512,32], index: 5, kind: input, shape index: {}]   ;;  %s2211_s6 = inlined_call_operand.<no memory space> [shape: f32[1,1], index: 6, kind: input, shape index: {}]   ;;  %s2212_s4 = inlined_call_operand.vmem [shape: f32[1,512], index: 4, kind: input, shape index: {}]   ;;  %s2213_s7 = inlined_call_operand.vmem [shape: f32[1,32], index: 7, kind: output, shape index: {}]  }
   0x1   :  { %v61_v0 = vld [vmem:[%s2206_s1 + $0xf8] sm:$0xff]  ;;  %v60_v1 = vld [vmem:[%s2206_s1 + $0xf0] sm:$0xff]  ;;  %v59_v2 = vld [vmem:[%s2206_s1 + $0xe8] sm:$0xff] }
   0x2   :  { %105 = vmatprep.subr.mxu0 %v61_v0  ;;  %v58_v3 = vld [vmem:[%s2206_s1 + $0xe0] sm:$0xff]  ;;  %v57_v4 = vld [vmem:[%s2206_s1 + $0xd8] sm:$0xff]  ;;  %v56_v5 = vld [vmem:[%s2206_s1 + $0xd0] sm:$0xff]  ;;  %v1544_v18 = vshrl.u32 %v95_v13, 7 }
   0x3   :  { %106 = vmatpush1.msra.mxu0 %v60_v1  ;;  %v55_v6 = vld [vmem:[%s2206_s1 + $0xc8] sm:$0xff]  ;;  %v54_v7 = vld [vmem:[%s2206_s1 + $0xc0] sm:$0xff]  ;;  %v53_v8 = vld [vmem:[%s2206_s1 + $0xb8] sm:$0xff] }
   0x4   :  { %107 = vmatprep.subr.mxu0 %v59_v2  ;;  %v52_v9 = vld [vmem:[%s2206_s1 + $0xb0] sm:$0xff]  ;;  %v51_v10 = vld [vmem:[%s2206_s1 + $0xa8] sm:$0xff]  ;;  %v50_v11 = vld [vmem:[%s2206_s1 + $0xa0] sm:$0xff]  ;;  %v101_v23 = vsub.s32 1, %v1544_v18 }
   0x5   :  { %108 = vmatpush1.msra.mxu0 %v58_v3  ;;  %v49_v12 = vld [vmem:[%s2206_s1 + $0x98] sm:$0xff]  ;;  %v48_v14 = vld [vmem:[%s2206_s1 + $0x90] sm:$0xff]  ;;  %v47_v15 = vld [vmem:[%s2206_s1 + $0x88] sm:$0xff] }
   0x6   :  { %109 = vmatprep.subr.mxu0 %v57_v4  ;;  %v46_v16 = vld [vmem:[%s2206_s1 + $0x80] sm:$0xff]  ;;  %v45_v17 = vld [vmem:[%s2206_s1 + $0x78] sm:$0xff]  ;;  %v44_v19 = vld [vmem:[%s2206_s1 + $0x70] sm:$0xff] }
   0x7   :  { %110 = vmatpush1.msra.mxu0 %v56_v5  ;;  %v43_v20 = vld [vmem:[%s2206_s1 + $0x68] sm:$0xff]  ;;  %v42_v21 = vld [vmem:[%s2206_s1 + $0x60] sm:$0xff]  ;;  %v41_v22 = vld [vmem:[%s2206_s1 + $0x58] sm:$0xff] }
   0x8   :  { %111 = vmatprep.subr.mxu0 %v55_v6  ;;  %v40_v24 = vld [vmem:[%s2206_s1 + $0x50] sm:$0xff]  ;;  %v39_v25 = vld [vmem:[%s2206_s1 + $0x48] sm:$0xff]  ;;  %v38_v26 = vld [vmem:[%s2206_s1 + $0x40] sm:$0xff] }
   0x9   :  { %112 = vmatpush1.msra.mxu0 %v54_v7  ;;  %v1571_v27 = vld [vmem:[%s2207_s0] sm:$0x3]  ;;  %v209_v28 = vld [vmem:[%s2208_s2 + $0xf8] sm:$0xff]  ;;  %v208_v31 = vld [vmem:[%s2208_s2 + $0xf0] sm:$0xff] }
   0xa   :  { %113 = vmatprep.subr.mxu0 %v53_v8  ;;  %v37_v29 = vld [vmem:[%s2206_s1 + $0x38] sm:$0xff]  ;;  %v102_v30 = vrot.slane %v1571_v27, %v101_v23  ;;  %242 = vmatprep.subr.mxu1 %v209_v28  ;;  %v207_v32 = vld [vmem:[%s2208_s2 + $0xe8] sm:$0xff]  ;;  %v36_v33 = vld [vmem:[%s2206_s1 + $0x30] sm:$0xff] }
   0xb   :  { %114 = vmatpush1.msra.mxu0 %v52_v9  ;;  %243 = vmatpush1.msra.mxu1 %v208_v31  ;;  %v206_v34 = vld [vmem:[%s2208_s2 + $0xe0] sm:$0xff]  ;;  %v35_v35 = vld [vmem:[%s2206_s1 + $0x28] sm:$0xff]  ;;  %v205_v36 = vld [vmem:[%s2208_s2 + $0xd8] sm:$0xff] }
   0xc   :  { %115 = vmatprep.subr.mxu0 %v51_v10  ;;  %169 = vmatprep.mubr.f32.mxu0 %v102_v30  ;;  %v34_v37 = vld [vmem:[%s2206_s1 + $0x20] sm:$0xff]  ;;  %v204_v38 = vld [vmem:[%s2208_s2 + $0xd0] sm:$0xff]  ;;  %v33_v39 = vld [vmem:[%s2206_s1 + $0x18] sm:$0xff] }
   0xd   :  { %116 = vmatpush1.msra.mxu0 %v50_v11  ;;  %244 = vmatprep.subr.mxu1 %v207_v32  ;;  %v203_v40 = vld [vmem:[%s2208_s2 + $0xc8] sm:$0xff]  ;;  %v32_v41 = vld [vmem:[%s2206_s1 + $0x10] sm:$0xff]  ;;  %v202_v42 = vld [vmem:[%s2208_s2 + $0xc0] sm:$0xff] }
   0xe   :  { %117 = vmatprep.subr.mxu0 %v49_v12  ;;  %245 = vmatpush1.msra.mxu1 %v206_v34  ;;  %v31_v43 = vld [vmem:[%s2206_s1 + $0x8] sm:$0xff]  ;;  %v201_v44 = vld [vmem:[%s2208_s2 + $0xb8] sm:$0xff]  ;;  %v30_v45 = vld [vmem:[%s2206_s1] sm:$0xff] }
   0xf   :  { %118 = vmatpush1.msra.mxu0 %v48_v14  ;;  %246 = vmatprep.subr.mxu1 %v205_v36  ;;  %v200_v46 = vld [vmem:[%s2208_s2 + $0xb0] sm:$0xff]  ;;  %v93_v47 = vld [vmem:[%s2206_s1 + $0x1f8] sm:$0xff]  ;;  %v199_v48 = vld [vmem:[%s2208_s2 + $0xa8] sm:$0xff] }
  0x10   :  { %119 = vmatprep.subr.mxu0 %v47_v15  ;;  %247 = vmatpush1.msra.mxu1 %v204_v38  ;;  %v92_v49 = vld [vmem:[%s2206_s1 + $0x1f0] sm:$0xff]  ;;  %v198_v50 = vld [vmem:[%s2208_s2 + $0xa0] sm:$0xff]  ;;  %v91_v51 = vld [vmem:[%s2206_s1 + $0x1e8] sm:$0xff] }
  0x11   :  { %120 = vmatpush1.msra.mxu0 %v46_v16  ;;  %248 = vmatprep.subr.mxu1 %v203_v40  ;;  %v197_v52 = vld [vmem:[%s2208_s2 + $0x98] sm:$0xff]  ;;  %v90_v53 = vld [vmem:[%s2206_s1 + $0x1e0] sm:$0xff]  ;;  %v196_v54 = vld [vmem:[%s2208_s2 + $0x90] sm:$0xff] }
  0x12   :  { %121 = vmatprep.subr.mxu0 %v45_v17  ;;  %249 = vmatpush1.msra.mxu1 %v202_v42  ;;  %v89_v55 = vld [vmem:[%s2206_s1 + $0x1d8] sm:$0xff]  ;;  %v195_v56 = vld [vmem:[%s2208_s2 + $0x88] sm:$0xff]  ;;  %v88_v57 = vld [vmem:[%s2206_s1 + $0x1d0] sm:$0xff] }
  0x13   :  { %122 = vmatpush1.msra.mxu0 %v44_v19  ;;  %250 = vmatprep.subr.mxu1 %v201_v44  ;;  %v194_v58 = vld [vmem:[%s2208_s2 + $0x80] sm:$0xff]  ;;  %v87_v59 = vld [vmem:[%s2206_s1 + $0x1c8] sm:$0xff]  ;;  %v193_v60 = vld [vmem:[%s2208_s2 + $0x78] sm:$0xff] }
  0x14   :  { %123 = vmatprep.subr.mxu0 %v43_v20  ;;  %251 = vmatpush1.msra.mxu1 %v200_v46  ;;  %v86_v61 = vld [vmem:[%s2206_s1 + $0x1c0] sm:$0xff]  ;;  %v192_v62 = vld [vmem:[%s2208_s2 + $0x70] sm:$0xff]  ;;  %v85_v63 = vld [vmem:[%s2206_s1 + $0x1b8] sm:$0xff] }
  0x15   :  { %124 = vmatpush1.msra.mxu0 %v42_v21  ;;  %252 = vmatprep.subr.mxu1 %v199_v48  ;;  %v191_v0 = vld [vmem:[%s2208_s2 + $0x68] sm:$0xff]  ;;  %v84_v1 = vld [vmem:[%s2206_s1 + $0x1b0] sm:$0xff]  ;;  %v190_v2 = vld [vmem:[%s2208_s2 + $0x60] sm:$0xff] }
  0x16   :  { %125 = vmatprep.subr.mxu0 %v41_v22  ;;  %253 = vmatpush1.msra.mxu1 %v198_v50  ;;  %v83_v3 = vld [vmem:[%s2206_s1 + $0x1a8] sm:$0xff]  ;;  %v189_v4 = vld [vmem:[%s2208_s2 + $0x58] sm:$0xff]  ;;  %v82_v5 = vld [vmem:[%s2206_s1 + $0x1a0] sm:$0xff] }
  0x17   :  { %126 = vmatpush1.msra.mxu0 %v40_v24  ;;  %254 = vmatprep.subr.mxu1 %v197_v52  ;;  %v188_v6 = vld [vmem:[%s2208_s2 + $0x50] sm:$0xff]  ;;  %v81_v7 = vld [vmem:[%s2206_s1 + $0x198] sm:$0xff]  ;;  %v187_v8 = vld [vmem:[%s2208_s2 + $0x48] sm:$0xff] }
  0x18   :  { %127 = vmatprep.subr.mxu0 %v39_v25  ;;  %255 = vmatpush1.msra.mxu1 %v196_v54  ;;  %v80_v9 = vld [vmem:[%s2206_s1 + $0x190] sm:$0xff]  ;;  %v186_v10 = vld [vmem:[%s2208_s2 + $0x40] sm:$0xff]  ;;  %v79_v11 = vld [vmem:[%s2206_s1 + $0x188] sm:$0xff] }
  0x19   :  { %128 = vmatpush1.msra.mxu0 %v38_v26  ;;  %256 = vmatprep.subr.mxu1 %v195_v56  ;;  %v185_v12 = vld [vmem:[%s2208_s2 + $0x38] sm:$0xff]  ;;  %v78_v13 = vld [vmem:[%s2206_s1 + $0x180] sm:$0xff]  ;;  %v184_v14 = vld [vmem:[%s2208_s2 + $0x30] sm:$0xff] }
  0x1a   :  { %129 = vmatprep.subr.mxu0 %v37_v29  ;;  %257 = vmatpush1.msra.mxu1 %v194_v58  ;;  %v77_v15 = vld [vmem:[%s2206_s1 + $0x178] sm:$0xff]  ;;  %v183_v16 = vld [vmem:[%s2208_s2 + $0x28] sm:$0xff]  ;;  %v76_v17 = vld [vmem:[%s2206_s1 + $0x170] sm:$0xff] }
  0x1b   :  { %130 = vmatpush1.msra.mxu0 %v36_v33  ;;  %258 = vmatprep.subr.mxu1 %v193_v60  ;;  %v182_v19 = vld [vmem:[%s2208_s2 + $0x20] sm:$0xff]  ;;  %v75_v20 = vld [vmem:[%s2206_s1 + $0x168] sm:$0xff]  ;;  %v181_v21 = vld [vmem:[%s2208_s2 + $0x18] sm:$0xff] }
  0x1c   :  { %131 = vmatprep.subr.mxu0 %v35_v35  ;;  %259 = vmatpush1.msra.mxu1 %v192_v62  ;;  %v74_v22 = vld [vmem:[%s2206_s1 + $0x160] sm:$0xff]  ;;  %v180_v24 = vld [vmem:[%s2208_s2 + $0x10] sm:$0xff]  ;;  %v73_v25 = vld [vmem:[%s2206_s1 + $0x158] sm:$0xff] }
  0x1d   :  { %132 = vmatpush1.msra.mxu0 %v34_v37  ;;  %260 = vmatprep.subr.mxu1 %v191_v0  ;;  %v179_v26 = vld [vmem:[%s2208_s2 + $0x8] sm:$0xff]  ;;  %v72_v28 = vld [vmem:[%s2206_s1 + $0x150] sm:$0xff]  ;;  %v178_v29 = vld [vmem:[%s2208_s2] sm:$0xff] }
  0x1e   :  { %133 = vmatprep.subr.mxu0 %v33_v39  ;;  %261 = vmatpush1.msra.mxu1 %v190_v2  ;;  %v71_v30 = vld [vmem:[%s2206_s1 + $0x148] sm:$0xff]  ;;  %v241_v31 = vld [vmem:[%s2208_s2 + $0x1f8] sm:$0xff]  ;;  %v70_v32 = vld [vmem:[%s2206_s1 + $0x140] sm:$0xff] }
  0x1f   :  { %134 = vmatpush1.msra.mxu0 %v32_v41  ;;  %262 = vmatprep.subr.mxu1 %v189_v4  ;;  %v240_v33 = vld [vmem:[%s2208_s2 + $0x1f0] sm:$0xff]  ;;  %v69_v34 = vld [vmem:[%s2206_s1 + $0x138] sm:$0xff]  ;;  %v239_v35 = vld [vmem:[%s2208_s2 + $0x1e8] sm:$0xff]  ;;  %v1796_v41 = vsub.s32 0, %v1544_v18 }
  0x20   :  { %135 = vmatprep.subr.mxu0 %v31_v43  ;;  %263 = vmatpush1.msra.mxu1 %v188_v6  ;;  %v68_v36 = vld [vmem:[%s2206_s1 + $0x130] sm:$0xff]  ;;  %v238_v37 = vld [vmem:[%s2208_s2 + $0x1e0] sm:$0xff]  ;;  %v67_v38 = vld [vmem:[%s2206_s1 + $0x128] sm:$0xff] }
  0x21   :  { %136 = vmatpush1.msra.mxu0 %v30_v45  ;;  %264 = vmatprep.subr.mxu1 %v187_v8  ;;  %v237_v39 = vld [vmem:[%s2208_s2 + $0x1d8] sm:$0xff]  ;;  %v66_v40 = vld [vmem:[%s2206_s1 + $0x120] sm:$0xff]  ;;  %v236_v42 = vld [vmem:[%s2208_s2 + $0x1d0] sm:$0xff]  ;;  %v98_v50 = vrot.slane %v1571_v27, %v1796_v41 }
  0x22   :  { %137 = vmatprep.subr.mxu0 %v93_v47  ;;  %265 = vmatpush1.msra.mxu1 %v186_v10  ;;  %v65_v43 = vld [vmem:[%s2206_s1 + $0x118] sm:$0xff]  ;;  %v235_v44 = vld [vmem:[%s2208_s2 + $0x1c8] sm:$0xff]  ;;  %v64_v45 = vld [vmem:[%s2206_s1 + $0x110] sm:$0xff] }
  0x23   :  { %138 = vmatpush2.msra.mxu0 %v92_v49  ;;  %266 = vmatprep.subr.mxu1 %v185_v12  ;;  %v234_v46 = vld [vmem:[%s2208_s2 + $0x1c0] sm:$0xff]  ;;  %v63_v47 = vld [vmem:[%s2206_s1 + $0x108] sm:$0xff]  ;;  %v233_v48 = vld [vmem:[%s2208_s2 + $0x1b8] sm:$0xff] }
  0x24   :  { %139 = vmatprep.subr.mxu0 %v91_v51  ;;  %267 = vmatpush1.msra.mxu1 %v184_v14  ;;  %v62_v49 = vld [vmem:[%s2206_s1 + $0x100] sm:$0xff]  ;;  %v232_v51 = vld [vmem:[%s2208_s2 + $0x1b0] sm:$0xff]  ;;  %v231_v52 = vld [vmem:[%s2208_s2 + $0x1a8] sm:$0xff] }
  0x25   :  { %140 = vmatpush2.msra.mxu0 %v90_v53  ;;  %268 = vmatprep.subr.mxu1 %v183_v16  ;;  %v230_v53 = vld [vmem:[%s2208_s2 + $0x1a0] sm:$0xff]  ;;  %v229_v27 = vld [vmem:[%s2208_s2 + $0x198] sm:$0xff]  ;;  %v228_v54 = vld [vmem:[%s2208_s2 + $0x190] sm:$0xff] }
  0x26   :  { %141 = vmatprep.subr.mxu0 %v89_v55  ;;  %269 = vmatpush1.msra.mxu1 %v182_v19  ;;  %v227_v55 = vld [vmem:[%s2208_s2 + $0x188] sm:$0xff]  ;;  %v226_v56 = vld [vmem:[%s2208_s2 + $0x180] sm:$0xff]  ;;  %v224_v58 = vld [vmem:[%s2208_s2 + $0x170] sm:$0xff] }
  0x27   :  { %142 = vmatpush2.msra.mxu0 %v88_v57  ;;  %270 = vmatprep.subr.mxu1 %v181_v21  ;;  %v225_v57 = vld [vmem:[%s2208_s2 + $0x178] sm:$0xff]  ;;  %v222_v60 = vld [vmem:[%s2208_s2 + $0x160] sm:$0xff]  ;;  %v220_v62 = vld [vmem:[%s2208_s2 + $0x150] sm:$0xff] }
  0x28   :  { %143 = vmatprep.subr.mxu0 %v87_v59  ;;  %271 = vmatpush1.msra.mxu1 %v180_v24  ;;  %v223_v59 = vld [vmem:[%s2208_s2 + $0x168] sm:$0xff]  ;;  %v218_v0 = vld [vmem:[%s2208_s2 + $0x140] sm:$0xff]  ;;  %v216_v2 = vld [vmem:[%s2208_s2 + $0x130] sm:$0xff] }
  0x29   :  { %144 = vmatpush2.msra.mxu0 %v86_v61  ;;  %272 = vmatprep.subr.mxu1 %v179_v26  ;;  %v221_v61 = vld [vmem:[%s2208_s2 + $0x158] sm:$0xff]  ;;  %v214_v4 = vld [vmem:[%s2208_s2 + $0x120] sm:$0xff]  ;;  %v212_v6 = vld [vmem:[%s2208_s2 + $0x110] sm:$0xff] }
  0x2a   :  { %145 = vmatprep.subr.mxu0 %v85_v63  ;;  %273 = vmatpush1.msra.mxu1 %v178_v29  ;;  %v219_v63 = vld [vmem:[%s2208_s2 + $0x148] sm:$0xff]  ;;  %v210_v8 = vld [vmem:[%s2208_s2 + $0x100] sm:$0xff] }
  0x2b   :  { %146 = vmatpush2.msra.mxu0 %v84_v1  ;;  %274 = vmatprep.subr.mxu1 %v241_v31  ;;  %v217_v1 = vld [vmem:[%s2208_s2 + $0x138] sm:$0xff]  ;;  %v1318_v10 = vld [vmem:[%s2209_s3 + $0xe4] ss:$16 sps:$4 sm:$0xff]  }
  0x2c   :  { %147 = vmatprep.subr.mxu0 %v83_v3  ;;  %275 = vmatpush2.msra.mxu1 %v240_v33  ;;  %v215_v3 = vld [vmem:[%s2208_s2 + $0x128] sm:$0xff]  ;;  %v1324_v12 = vld [vmem:[%s2209_s3 + $0xc4] ss:$16 sps:$4 sm:$0xff]  }
  0x2d   :  { %148 = vmatpush2.msra.mxu0 %v82_v5  ;;  %276 = vmatprep.subr.mxu1 %v239_v35  ;;  %v213_v5 = vld [vmem:[%s2208_s2 + $0x118] sm:$0xff]  ;;  %v1330_v14 = vld [vmem:[%s2209_s3 + $0xa4] ss:$16 sps:$4 sm:$0xff]  }
  0x2e   :  { %149 = vmatprep.subr.mxu0 %v81_v7  ;;  %277 = vmatpush2.msra.mxu1 %v238_v37  ;;  %v211_v7 = vld [vmem:[%s2208_s2 + $0x108] sm:$0xff]  ;;  %v1336_v16 = vld [vmem:[%s2209_s3 + $0x84] ss:$16 sps:$4 sm:$0xff]  }
  0x2f   :  { %150 = vmatpush2.msra.mxu0 %v80_v9  ;;  %278 = vmatprep.subr.mxu1 %v237_v39  ;;  %v1316_v9 = vld [vmem:[%s2209_s3 + $0xe0] ss:$16 sps:$4 sm:$0xff]   ;;  %v1342_v19 = vld [vmem:[%s2209_s3 + $0x64] ss:$16 sps:$4 sm:$0xff]   ;;  %v1325_v39 = vld [vmem:[%s2209_s3 + $0xc8] ss:$16 sps:$4 sm:$0xff]  }
  0x30   :  { %151 = vmatprep.subr.mxu0 %v79_v11  ;;  %279 = vmatpush2.msra.mxu1 %v236_v42  ;;  %v1321_v11 = vld [vmem:[%s2209_s3 + $0xec] ss:$16 sps:$4 sm:$0xff]   ;;  %v1348_v21 = vld [vmem:[%s2209_s3 + $0x44] ss:$16 sps:$4 sm:$0xff]   ;;  %v1331_v42 = vld [vmem:[%s2209_s3 + $0xa8] ss:$16 sps:$4 sm:$0xff]  }
  0x31   :  { %152 = vmatpush2.msra.mxu0 %v78_v13  ;;  %280 = vmatprep.subr.mxu1 %v235_v44  ;;  %v1322_v13 = vld [vmem:[%s2209_s3 + $0xc0] ss:$16 sps:$4 sm:$0xff]   ;;  %v1354_v24 = vld [vmem:[%s2209_s3 + $0x24] ss:$16 sps:$4 sm:$0xff]   ;;  %v1337_v44 = vld [vmem:[%s2209_s3 + $0x88] ss:$16 sps:$4 sm:$0xff]  }
  0x32   :  { %153 = vmatprep.subr.mxu0 %v77_v15  ;;  %281 = vmatpush2.msra.mxu1 %v234_v46  ;;  %v1328_v15 = vld [vmem:[%s2209_s3 + $0xa0] ss:$16 sps:$4 sm:$0xff]   ;;  %v1360_v26 = vld [vmem:[%s2209_s3 + $0x4] ss:$16 sps:$4 sm:$0xff]   ;;  %v1343_v46 = vld [vmem:[%s2209_s3 + $0x68] ss:$16 sps:$4 sm:$0xff]  }
  0x33   :  { %154 = vmatpush2.msra.mxu0 %v76_v17  ;;  %282 = vmatprep.subr.mxu1 %v233_v48  ;;  %v1334_v17 = vld [vmem:[%s2209_s3 + $0x80] ss:$16 sps:$4 sm:$0xff]   ;;  %v1366_v29 = vld [vmem:[%s2209_s3 + $0x1e4] ss:$16 sps:$4 sm:$0xff]   ;;  %v1349_v48 = vld [vmem:[%s2209_s3 + $0x48] ss:$16 sps:$4 sm:$0xff]  }
  0x34   :  { %155 = vmatprep.subr.mxu0 %v75_v20  ;;  %283 = vmatpush2.msra.mxu1 %v232_v51  ;;  %v1340_v20 = vld [vmem:[%s2209_s3 + $0x60] ss:$16 sps:$4 sm:$0xff]   ;;  %v1372_v31 = vld [vmem:[%s2209_s3 + $0x1c4] ss:$16 sps:$4 sm:$0xff]   ;;  %v1363_v51 = vld [vmem:[%s2209_s3 + $0xc] ss:$16 sps:$4 sm:$0xff]  }
  0x35   :  { %156 = vmatpush2.msra.mxu0 %v74_v22  ;;  %284 = vmatprep.subr.mxu1 %v231_v52  ;;  %v1346_v22 = vld [vmem:[%s2209_s3 + $0x40] ss:$16 sps:$4 sm:$0xff]   ;;  %v1361_v52 = vld [vmem:[%s2209_s3 + $0x8] ss:$16 sps:$4 sm:$0xff]  }
  0x36   :  { %157 = vmatprep.subr.mxu0 %v73_v25  ;;  %285 = vmatpush2.msra.mxu1 %v230_v53  ;;  %v1352_v25 = vld [vmem:[%s2209_s3 + $0x20] ss:$16 sps:$4 sm:$0xff]   ;;  %v1369_v53 = vld [vmem:[%s2209_s3 + $0x1ec] ss:$16 sps:$4 sm:$0xff]  }
  0x37   :  { %158 = vmatpush2.msra.mxu0 %v72_v28  ;;  %286 = vmatprep.subr.mxu1 %v229_v27  ;;  %v1358_v28 = vld [vmem:[%s2209_s3] ss:$16 sps:$4 sm:$0xff]   ;;  %v1367_v27 = vld [vmem:[%s2209_s3 + $0x1e8] ss:$16 sps:$4 sm:$0xff]  }
  0x38   :  { %159 = vmatprep.subr.mxu0 %v71_v30  ;;  %287 = vmatpush2.msra.mxu1 %v228_v54  ;;  %v1364_v30 = vld [vmem:[%s2209_s3 + $0x1e0] ss:$16 sps:$4 sm:$0xff]   ;;  %v1375_v54 = vld [vmem:[%s2209_s3 + $0x1cc] ss:$16 sps:$4 sm:$0xff]  }
  0x39   :  { %160 = vmatpush2.msra.mxu0 %v70_v32  ;;  %288 = vmatprep.subr.mxu1 %v227_v55  ;;  %v1370_v32 = vld [vmem:[%s2209_s3 + $0x1c0] ss:$16 sps:$4 sm:$0xff]   ;;  %v1373_v55 = vld [vmem:[%s2209_s3 + $0x1c8] ss:$16 sps:$4 sm:$0xff]  }
  0x3a   :  { %161 = vmatprep.subr.mxu0 %v69_v34  ;;  %289 = vmatpush2.msra.mxu1 %v226_v56  ;;  %v1378_v56 = vld [vmem:[%s2209_s3 + $0x1a4] ss:$16 sps:$4 sm:$0xff]  }
  0x3b   :  { %162 = vmatpush2.msra.mxu0 %v68_v36  ;;  %290 = vmatprep.subr.mxu1 %v225_v57  ;;  %v1319_v36 = vld [vmem:[%s2209_s3 + $0xe8] ss:$16 sps:$4 sm:$0xff]   ;;  %v1381_v57 = vld [vmem:[%s2209_s3 + $0x1ac] ss:$16 sps:$4 sm:$0xff]  }
  0x3c   :  { %163 = vmatprep.subr.mxu0 %v67_v38  ;;  %291 = vmatpush2.msra.mxu1 %v224_v58  ;;  %v1327_v38 = vld [vmem:[%s2209_s3 + $0xcc] ss:$16 sps:$4 sm:$0xff]   ;;  %v1376_v58 = vld [vmem:[%s2209_s3 + $0x1a0] ss:$16 sps:$4 sm:$0xff]  }
  0x3d   :  { %164 = vmatpush2.msra.mxu0 %v66_v40  ;;  %292 = vmatprep.subr.mxu1 %v223_v59  ;;  %v1333_v40 = vld [vmem:[%s2209_s3 + $0xac] ss:$16 sps:$4 sm:$0xff]   ;;  %v1379_v59 = vld [vmem:[%s2209_s3 + $0x1a8] ss:$16 sps:$4 sm:$0xff]  }
  0x3e   :  { %165 = vmatprep.subr.mxu0 %v65_v43  ;;  %293 = vmatpush2.msra.mxu1 %v222_v60  ;;  %v1339_v43 = vld [vmem:[%s2209_s3 + $0x8c] ss:$16 sps:$4 sm:$0xff]   ;;  %v1384_v60 = vld [vmem:[%s2209_s3 + $0x184] ss:$16 sps:$4 sm:$0xff]  }
  0x3f   :  { %166 = vmatpush2.msra.mxu0 %v64_v45  ;;  %294 = vmatprep.subr.mxu1 %v221_v61  ;;  %v1345_v45 = vld [vmem:[%s2209_s3 + $0x6c] ss:$16 sps:$4 sm:$0xff]  }
  0x40   :  { %167 = vmatprep.subr.mxu0 %v63_v47  ;;  %295 = vmatpush2.msra.mxu1 %v220_v62  ;;  %v1351_v47 = vld [vmem:[%s2209_s3 + $0x4c] ss:$16 sps:$4 sm:$0xff]   ;;  %v1382_v62 = vld [vmem:[%s2209_s3 + $0x180] ss:$16 sps:$4 sm:$0xff]  }
  0x41   :  { %168 = vmatpush2.msra.mxu0 %v62_v49  ;;  %296 = vmatprep.subr.mxu1 %v219_v63  ;;  %v1357_v49 = vld [vmem:[%s2209_s3 + $0x2c] ss:$16 sps:$4 sm:$0xff]   ;;  %v1385_v63 = vld [vmem:[%s2209_s3 + $0x188] ss:$16 sps:$4 sm:$0xff]  }
  0x42   :  { %170 = vmatmul.mubr.f32.vlgmr.msra.gmra.mxu0 %v98_v50  ;;  %297 = vmatpush2.msra.mxu1 %v218_v0  ;;  %v1355_v50 = vld [vmem:[%s2209_s3 + $0x28] ss:$16 sps:$4 sm:$0xff]   ;;  %v1387_v61 = vld [vmem:[%s2209_s3 + $0x18c] ss:$16 sps:$4 sm:$0xff]   ;;  %v1388_v0 = vld [vmem:[%s2209_s3 + $0x160] ss:$16 sps:$4 sm:$0xff]  }
  0x43   :  { %298 = vmatprep.subr.mxu1 %v217_v1  ;;  %725 = vmatprep.subr.bf16.mxu0 %v1318_v10  ;;  %v1390_v1 = vld [vmem:[%s2209_s3 + $0x164] ss:$16 sps:$4 sm:$0xff]   ;;  %v1400_v10 = vld [vmem:[%s2209_s3 + $0x120] ss:$16 sps:$4 sm:$0xff]  }
  0x44   :  { %299 = vmatpush2.msra.mxu1 %v216_v2  ;;  %726 = vmatpush1.bf16.msra.mxu0 %v1316_v9  ;;  %v1391_v2 = vld [vmem:[%s2209_s3 + $0x168] ss:$16 sps:$4 sm:$0xff]   ;;  %v1405_v9 = vld [vmem:[%s2209_s3 + $0x12c] ss:$16 sps:$4 sm:$0xff]  }
  0x45   :  { %300 = vmatprep.subr.mxu1 %v215_v3  ;;  %727 = vmatprep.subr.bf16.mxu0 %v1324_v12  ;;  %v1393_v3 = vld [vmem:[%s2209_s3 + $0x16c] ss:$16 sps:$4 sm:$0xff]   ;;  %v1408_v12 = vld [vmem:[%s2209_s3 + $0x104] ss:$16 sps:$4 sm:$0xff]  }
  0x46   :  { %301 = vmatpush2.msra.mxu1 %v214_v4  ;;  %v1396_v4 = vld [vmem:[%s2209_s3 + $0x144] ss:$16 sps:$4 sm:$0xff]  }
  0x47   :  { %302 = vmatprep.subr.mxu1 %v213_v5  ;;  %v1399_v5 = vld [vmem:[%s2209_s3 + $0x14c] ss:$16 sps:$4 sm:$0xff]  }
  0x48   :  { %303 = vmatpush2.msra.mxu1 %v212_v6  ;;  %728 = vmatpush1.bf16.msra.mxu0 %v1322_v13  ;;  %v1394_v6 = vld [vmem:[%s2209_s3 + $0x140] ss:$16 sps:$4 sm:$0xff]   ;;  %v1411_v13 = vld [vmem:[%s2209_s3 + $0x10c] ss:$16 sps:$4 sm:$0xff]  }
  0x49   :  { %304 = vmatprep.subr.mxu1 %v211_v7  ;;  %729 = vmatprep.subr.bf16.mxu0 %v1330_v14  ;;  %v1397_v7 = vld [vmem:[%s2209_s3 + $0x148] ss:$16 sps:$4 sm:$0xff]   ;;  %v1406_v14 = vld [vmem:[%s2209_s3 + $0x100] ss:$16 sps:$4 sm:$0xff]  }
  0x4a   :  { %305 = vmatpush2.msra.mxu1 %v210_v8  ;;  %v1402_v8 = vld [vmem:[%s2209_s3 + $0x124] ss:$16 sps:$4 sm:$0xff]  }
  0x4b   :  { %766 = vmatprep.subr.bf16.mxu1 %v1321_v11  ;;  %v1403_v11 = vld [vmem:[%s2209_s3 + $0x128] ss:$16 sps:$4 sm:$0xff]  }
  0x4c   :  { %730 = vmatpush1.bf16.msra.mxu0 %v1328_v15  ;;  %v1409_v15 = vld [vmem:[%s2209_s3 + $0x108] ss:$16 sps:$4 sm:$0xff]  }
  0x4d   :  { %731 = vmatprep.subr.bf16.mxu0 %v1336_v16  ;;  %v1412_v16 = vld [vmem:[%s2210_s5 + $0x78] sm:$0xff]  }
  0x50   :  { %732 = vmatpush1.bf16.msra.mxu0 %v1334_v17  ;;  %v1413_v17 = vld [vmem:[%s2210_s5 + $0xf8] sm:$0xff]  }
  0x51   :  { %733 = vmatprep.subr.bf16.mxu0 %v1342_v19 }
  0x54   :  { %734 = vmatpush1.bf16.msra.mxu0 %v1340_v20 }
  0x55   :  { %735 = vmatprep.subr.bf16.mxu0 %v1348_v21 }
  0x58   :  { %736 = vmatpush1.bf16.msra.mxu0 %v1346_v22 }
  0x59   :  { %737 = vmatprep.subr.bf16.mxu0 %v1354_v24 }
  0x5c   :  { %738 = vmatpush1.bf16.msra.mxu0 %v1352_v25 }
  0x5d   :  { %739 = vmatprep.subr.bf16.mxu0 %v1360_v26 }
  0x60   :  { %740 = vmatpush1.bf16.msra.mxu0 %v1358_v28 }
  0x61   :  { %741 = vmatprep.subr.bf16.mxu0 %v1366_v29 }
  0x64   :  { %742 = vmatpush2.bf16.msra.mxu0 %v1364_v30  ;;  %v1414_v30 = vld [vmem:[%s2210_s5 + $0x38] sm:$0xff]  }
  0x65   :  { %743 = vmatprep.subr.bf16.mxu0 %v1372_v31  ;;  %v1415_v31 = vld [vmem:[%s2210_s5 + $0xb8] sm:$0xff]  }
  0x68   :  { %744 = vmatpush2.bf16.msra.mxu0 %v1370_v32 }
  0x69   :  { %745 = vmatprep.subr.bf16.mxu0 %v1378_v56  ;;  %v1439_v56 = vld [vmem:[%s2210_s5 + $0x88] sm:$0xff]  }
  0x6c   :  { %746 = vmatpush2.bf16.msra.mxu0 %v1376_v58  ;;  %v1441_v58 = vld [vmem:[%s2210_s5 + $0xc0] sm:$0xff]  }
  0x6d   :  { %747 = vmatprep.subr.bf16.mxu0 %v1384_v60  ;;  %v1443_v60 = vld [vmem:[%s2210_s5 + $0x80] sm:$0xff]  }
  0x70   :  { %748 = vmatpush2.bf16.msra.mxu0 %v1382_v62  ;;  %v12_v62 = vstv %s2211_s6 }
  0x71   :  { %749 = vmatprep.subr.bf16.mxu0 %v1390_v1  ;;  %13 = vst [vmem:[#allocation2] sm:$0x1] %v12_v62  ;;  %v383_v1 = vld [vmem:[%s2212_s4] sm:$0xf] }
  0x74   :  { %750 = vmatpush2.bf16.msra.mxu0 %v1388_v0  ;;  %v715_v0 = vsub.s32 2, %v1544_v18 }
  0x75   :  { %751 = vmatprep.subr.bf16.mxu0 %v1396_v4 }
  0x76   :  { %v716_v4 = vrot.slane %v383_v1, %v715_v0 }
  0x78   :  { %752 = vmatpush2.bf16.msra.mxu0 %v1394_v6 }
  0x79   :  { %753 = vmatprep.subr.bf16.mxu0 %v1402_v8 }
  0x7c   :  { %754 = vmatpush2.bf16.msra.mxu0 %v1400_v10 }
  0x7d   :  { %755 = vmatprep.subr.bf16.mxu0 %v1408_v12 }
  0x80   :  { %756 = vmatpush2.bf16.msra.mxu0 %v1406_v14 }
  0x81   :  { %1270 = vmatprep.subr.bf16.mxu0 %v1412_v16 }
 0x102   :  { %v1956_v33 = vpop.f32.mrf.mxu0 }
 0x103   :  { %v176_v37 = vmul.f32 %v1956_v33, %v1956_v33 }
 0x104   :  { %v1958_v34 = vpop.f32.mrf.mxu0 }
 0x105   :  { %v177_v35 = vmul.f32 %v1958_v34, %v1958_v34 }
 0x107   :  { %306 = vmatprep.mubr.f32.mxu1 %v177_v35  ;;  %v1416_v35 = vld [vmem:[%s2210_s5 + $0x70] sm:$0xff]  }
 0x108   :  { %307 = vmatmul.mubr.f32.vlgmr.msra.gmra.mxu1 %v176_v37  ;;  %v1420_v37 = vld [vmem:[%s2210_s5 + $0x68] sm:$0xff]  }
 0x109   :  { %767 = vmatpush1.bf16.msra.mxu1 %v1319_v36  ;;  %v1419_v36 = vld [vmem:[%s2210_s5 + $0xb0] sm:$0xff]  }
 0x10a   :  { %768 = vmatprep.subr.bf16.mxu1 %v1327_v38  ;;  %v1421_v38 = vld [vmem:[%s2210_s5 + $0xe8] sm:$0xff]  }
 0x10d   :  { %769 = vmatpush1.bf16.msra.mxu1 %v1325_v39  ;;  %v1422_v39 = vld [vmem:[%s2210_s5 + $0x28] sm:$0xff]  }
 0x10e   :  { %770 = vmatprep.subr.bf16.mxu1 %v1333_v40  ;;  %v1423_v40 = vld [vmem:[%s2210_s5 + $0xa8] sm:$0xff]  }
 0x111   :  { %771 = vmatpush1.bf16.msra.mxu1 %v1331_v42  ;;  %v1424_v42 = vld [vmem:[%s2210_s5 + $0x60] sm:$0xff]  }
 0x112   :  { %772 = vmatprep.subr.bf16.mxu1 %v1339_v43  ;;  %v1425_v43 = vld [vmem:[%s2210_s5 + $0xe0] sm:$0xff]  }
 0x115   :  { %773 = vmatpush1.bf16.msra.mxu1 %v1337_v44  ;;  %v1426_v44 = vld [vmem:[%s2210_s5 + $0x20] sm:$0xff]  }
 0x116   :  { %774 = vmatprep.subr.bf16.mxu1 %v1345_v45  ;;  %v1427_v45 = vld [vmem:[%s2210_s5 + $0xa0] sm:$0xff]  }
 0x119   :  { %775 = vmatpush1.bf16.msra.mxu1 %v1343_v46  ;;  %v1428_v46 = vld [vmem:[%s2210_s5 + $0x58] sm:$0xff]  }
 0x11a   :  { %776 = vmatprep.subr.bf16.mxu1 %v1351_v47  ;;  %v1429_v47 = vld [vmem:[%s2210_s5 + $0xd8] sm:$0xff]  }
 0x11d   :  { %777 = vmatpush1.bf16.msra.mxu1 %v1349_v48  ;;  %v1430_v48 = vld [vmem:[%s2210_s5 + $0x18] sm:$0xff]  }
 0x11e   :  { %778 = vmatprep.subr.bf16.mxu1 %v1357_v49  ;;  %v1431_v49 = vld [vmem:[%s2210_s5 + $0x98] sm:$0xff]  }
 0x121   :  { %779 = vmatpush1.bf16.msra.mxu1 %v1355_v50  ;;  %v1432_v50 = vld [vmem:[%s2210_s5 + $0x50] sm:$0xff]  }
 0x122   :  { %780 = vmatprep.subr.bf16.mxu1 %v1363_v51  ;;  %v1433_v51 = vld [vmem:[%s2210_s5 + $0xd0] sm:$0xff]  }
 0x125   :  { %781 = vmatpush1.bf16.msra.mxu1 %v1361_v52  ;;  %v1434_v52 = vld [vmem:[%s2210_s5 + $0x10] sm:$0xff]  }
 0x126   :  { %782 = vmatprep.subr.bf16.mxu1 %v1369_v53  ;;  %v1435_v53 = vld [vmem:[%s2210_s5 + $0x90] sm:$0xff]  }
 0x129   :  { %783 = vmatpush2.bf16.msra.mxu1 %v1367_v27  ;;  %v1436_v27 = vld [vmem:[%s2210_s5 + $0x48] sm:$0xff]  }
 0x12a   :  { %784 = vmatprep.subr.bf16.mxu1 %v1375_v54  ;;  %v1437_v54 = vld [vmem:[%s2210_s5 + $0xc8] sm:$0xff]  }
 0x12d   :  { %785 = vmatpush2.bf16.msra.mxu1 %v1373_v55  ;;  %v1438_v55 = vld [vmem:[%s2210_s5 + $0x8] sm:$0xff]  }
 0x12e   :  { %786 = vmatprep.subr.bf16.mxu1 %v1381_v57  ;;  %v1440_v57 = vld [vmem:[%s2210_s5 + $0x40] sm:$0xff]  }
 0x131   :  { %787 = vmatpush2.bf16.msra.mxu1 %v1379_v59  ;;  %v1442_v59 = vld [vmem:[%s2210_s5] sm:$0xff]  }
 0x132   :  { %788 = vmatprep.subr.bf16.mxu1 %v1387_v61  ;;  %v1452_v61 = vmov 0  }
 0x133   :  { %1315 = vset.pattern.permute.xlu0 %v1452_v61 }
 0x135   :  { %789 = vmatpush2.bf16.msra.mxu1 %v1385_v63  ;;  %v879_v63 = vld [vmem:[#allocation2] sm:$0x1] }
 0x136   :  { %790 = vmatprep.subr.bf16.mxu1 %v1393_v3  ;;  %882 = vperm.xlu0 %1315, %v879_v63   ;;  %v708_v3 = vrot.slane %v383_v1, %v1796_v41 }
 0x139   :  { %791 = vmatpush2.bf16.msra.mxu1 %v1391_v2  ;;  %v719_v2 = vsub.s32 3, %v1544_v18 }
 0x13a   :  { %792 = vmatprep.subr.bf16.mxu1 %v1399_v5  ;;  %v712_v5 = vrot.slane %v383_v1, %v101_v23 }
 0x13b   :  { %v720_v6 = vrot.slane %v383_v1, %v719_v2 }
 0x13d   :  { %793 = vmatpush2.bf16.msra.mxu1 %v1397_v7 }
 0x13e   :  { %794 = vmatprep.subr.bf16.mxu1 %v1405_v9 }
 0x141   :  { %795 = vmatpush2.bf16.msra.mxu1 %v1403_v11 }
 0x142   :  { %796 = vmatprep.subr.bf16.mxu1 %v1411_v13 }
 0x145   :  { %797 = vmatpush2.bf16.msra.mxu1 %v1409_v15 }
 0x146   :  { %1292 = vmatprep.subr.bf16.mxu1 %v1413_v17 }
 0x1c8   :  { %v308_v19 = vpop.f32.mrf.mxu1 }
 0x1c9   :  { %v309_v20 = vadd.f32 1e-05, %v308_v19 }
 0x1ca   :  { %v310_v21 = vpop.f32.mrf.mxu1 }
 0x1cb   :  { %1444 = vrsqrt.f32 %v309_v20  ;;  %v311_v22 = vadd.f32 1e-05, %v310_v21 }
 0x1cd   :  { %1446 = vrsqrt.f32 %v311_v22 }
 0x1d8   :  { %v1445_v24 = vpop.eup %1444 }
 0x1d9   :  { %v315_v26 = vmul.f32 %v1445_v24, %v1956_v33  ;;  %v1417_v33 = vld [vmem:[%s2210_s5 + $0xf0] sm:$0xff]  }
 0x1da   :  { %v1447_v25 = vpop.eup %1446 }
 0x1db   :  { %v316_v28 = vmul.f32 %v1447_v25, %v1958_v34  ;;  %v317_v32 = vpack.c.bf16 %v315_v26, %v315_v26  ;;  %v1418_v34 = vld [vmem:[%s2210_s5 + $0x30] sm:$0xff]  }
 0x1dd   :  { %v318_v29 = vpack.c.bf16 %v316_v28, %v316_v28  ;;  %v883_v28 = vpop.permute.xlu0 %882 }
 0x1df   :  { %757 = vmatprep.mubr.bf16.mxu0 %v318_v29  ;;  %798 = vmatprep.mubr.bf16.mxu1 %v318_v29 }
 0x1e0   :  { %758 = vmatmul.mubr.bf16.vlgmr.msra.gmra.mxu0 %v317_v32  ;;  %799 = vmatmul.mubr.bf16.vlgmr.msra.gmra.mxu1 %v317_v32 }
 0x1e1   :  { %1271 = vmatpush3.bf16.msra.mxu0 %v1414_v30  ;;  %1293 = vmatpush3.bf16.msra.mxu1 %v1415_v31  ;;  %v888_v31 = vrot.slane %v883_v28, %v1796_v41 }
 0x1e2   :  { %1272 = vmatprep.subr.bf16.mxu0 %v1416_v35  ;;  %1294 = vmatprep.subr.bf16.mxu1 %v1417_v33 }
 0x1e5   :  { %1273 = vmatpush3.bf16.msra.mxu0 %v1418_v34  ;;  %1295 = vmatpush3.bf16.msra.mxu1 %v1419_v36 }
 0x1e6   :  { %1274 = vmatprep.subr.bf16.mxu0 %v1420_v37  ;;  %1296 = vmatprep.subr.bf16.mxu1 %v1421_v38 }
 0x1e9   :  { %1275 = vmatpush3.bf16.msra.mxu0 %v1422_v39  ;;  %1297 = vmatpush3.bf16.msra.mxu1 %v1423_v40 }
 0x1ea   :  { %1276 = vmatprep.subr.bf16.mxu0 %v1424_v42  ;;  %1298 = vmatprep.subr.bf16.mxu1 %v1425_v43 }
 0x1ed   :  { %1277 = vmatpush3.bf16.msra.mxu0 %v1426_v44  ;;  %1299 = vmatpush3.bf16.msra.mxu1 %v1427_v45 }
 0x1ee   :  { %1278 = vmatprep.subr.bf16.mxu0 %v1428_v46  ;;  %1300 = vmatprep.subr.bf16.mxu1 %v1429_v47 }
 0x1f1   :  { %1279 = vmatpush3.bf16.msra.mxu0 %v1430_v48  ;;  %1301 = vmatpush3.bf16.msra.mxu1 %v1431_v49 }
 0x1f2   :  { %1280 = vmatprep.subr.bf16.mxu0 %v1432_v50  ;;  %1302 = vmatprep.subr.bf16.mxu1 %v1433_v51 }
 0x1f5   :  { %1281 = vmatpush3.bf16.msra.mxu0 %v1434_v52  ;;  %1303 = vmatpush3.bf16.msra.mxu1 %v1435_v53 }
 0x1f6   :  { %1282 = vmatprep.subr.bf16.mxu0 %v1436_v27  ;;  %1304 = vmatprep.subr.bf16.mxu1 %v1437_v54 }
 0x1f9   :  { %1283 = vmatpush3.bf16.msra.mxu0 %v1438_v55  ;;  %1305 = vmatpush3.bf16.msra.mxu1 %v1439_v56 }
 0x1fa   :  { %1284 = vmatprep.subr.bf16.mxu0 %v1440_v57  ;;  %1306 = vmatprep.subr.bf16.mxu1 %v1441_v58 }
 0x1fd   :  { %1285 = vmatpush3.bf16.msra.mxu0 %v1442_v59  ;;  %1307 = vmatpush3.bf16.msra.mxu1 %v1443_v60 }
 0x2a0   :  { %v759_v7 = vpop.f32.mrf.mxu0  ;;  %v800_v8 = vpop.f32.mrf.mxu1 }
 0x2a1   :  { %v760_v9 = vadd.f32 %v759_v7, %v708_v3  ;;  %v801_v10 = vadd.f32 %v800_v8, %v716_v4 }
 0x2a2   :  { %v761_v11 = vpop.f32.mrf.mxu0  ;;  %v802_v12 = vpop.f32.mrf.mxu1 }
 0x2a3   :  { %v762_v13 = vadd.f32 %v761_v11, %v712_v5  ;;  %v803_v14 = vadd.f32 %v802_v12, %v720_v6  ;;  %v807_v15 = vmax.f32 %v760_v9, 0.0  ;;  %v809_v16 = vmax.f32 %v801_v10, 0.0 }
 0x2a4   :  { %v763_v17 = vpop.f32.mrf.mxu0  ;;  %v804_v19 = vpop.f32.mrf.mxu1 }
 0x2a5   :  { %v808_v20 = vmax.f32 %v762_v13, 0.0  ;;  %v810_v21 = vmax.f32 %v803_v14, 0.0  ;;  %v811_v23 = vpack.c.bf16 %v807_v15, %v807_v15  ;;  %v813_v26 = vpack.c.bf16 %v809_v16, %v809_v16 }
 0x2a6   :  { %v764_v22 = vpop.f32.mrf.mxu0  ;;  %v805_v24 = vpop.f32.mrf.mxu1 }
 0x2a7   :  { %v812_v25 = vpack.c.bf16 %v808_v20, %v808_v20  ;;  %v814_v18 = vpack.c.bf16 %v810_v21, %v810_v21 }
 0x2a9   :  { %1113 = vmatprep.mubr.bf16.mxu0 %v812_v25  ;;  %1153 = vmatprep.mubr.bf16.mxu1 %v814_v18 }
 0x2aa   :  { %1114 = vmatmul.mubr.bf16.vlgmr.msra.gmra.mxu0 %v811_v23  ;;  %1154 = vmatmul.mubr.bf16.vlgmr.msra.gmra.mxu1 %v813_v26 }
 0x36a   :  { %v1286_v29 = vpop.f32.mrf.mxu0  ;;  %v1308_v30 = vpop.f32.mrf.mxu1 }
 0x36c   :  { %v1287_v32 = vpop.f32.mrf.mxu0  ;;  %v1309_v35 = vpop.f32.mrf.mxu1 }
 0x36d   :  { %v1288_v33 = vadd.f32 %v1287_v32, %v1286_v29  ;;  %v1310_v38 = vadd.f32 %v1309_v35, %v1308_v30 }
 0x36e   :  { %v1289_v34 = vpop.f32.mrf.mxu0  ;;  %v1311_v36 = vpop.f32.mrf.mxu1 }
 0x36f   :  { %v1116_v37 = vadd.f32 %v1288_v33, %v888_v31 }
 0x370   :  { %v1290_v39 = vpop.f32.mrf.mxu0  ;;  %v1312_v40 = vpop.f32.mrf.mxu1 }
 0x371   :  { %v1156_v42 = vadd.f32 %v1310_v38, %v1116_v37 }
 0x373   :  { %v1269_v43 = vmul.f32 -1.442695, %v1156_v42 }
 0x375   :  { %1448 = vpow2.f32 %v1269_v43 }
 0x382   :  { %v1449_v44 = vpop.eup %1448 }
 0x383   :  { %v1164_v45 = vadd.f32 1.0, %v1449_v44 }
 0x385   :  { %1450 = vrcp.f32 %v1164_v45 }
 0x392   :  { %v1451_v46 = vpop.eup %1450 }
 0x393   :  { %1168 = vst.msk [vmem:[%s2213_s7] sm:$0x1] %vm1167_vm0, %v1451_v46 }

</bundles_post_ra>
